<compile_context>
chip_gen: v7x
topology: tpu7x:2x2x1
jax: 0.10.0
libtpu: 0.0.40
codegen_flags: <defaults>
</compile_context>

<pallas_src>
import jax
import jax.numpy as jnp
from jax.experimental import pallas as pl
from jax.experimental.pallas import tpu as pltpu


# ---------------------------------------------------------------------------
# Tiny-B path: whole arrays in VMEM, no grid (no per-step pipeline overhead).
# ---------------------------------------------------------------------------
def _rowsum_relu6_small_kernel(x_ref, o_ref):
    # x_ref: (B, K) f32, o_ref: (B, N) f32.
    # F.linear(x, ones(N, K)) == sum(x, axis=-1) broadcast over N.
    row_sum = jnp.sum(x_ref[...], axis=-1, keepdims=True)      # (B, 1) XLU reduce
    clipped = jnp.minimum(jnp.maximum(row_sum, 0.0), 6.0)      # relu6 on (B, 1)
    o_ref[...] = jnp.broadcast_to(clipped, o_ref.shape)        # broadcast after clamp


# ---------------------------------------------------------------------------
# Large-B path: lane-dense (K, B) -> (N, B) layout, 1-D grid over B.
# ---------------------------------------------------------------------------
def _rowsum_relu6_lane_dense_kernel(xt_ref, ot_ref):
    # xt_ref: (K, block_b), ot_ref: (N, block_b); batch B is the lane axis.
    k_dim = xt_ref.shape[0]
    s = xt_ref[0:1, :]                                          # (1, block_b)
    for k in range(1, k_dim):                                   # K-1 VPU adds, no XLU
        s = s + xt_ref[k:k + 1, :]
    s = jnp.minimum(jnp.maximum(s, 0.0), 6.0)                   # relu6 before broadcast
    ot_ref[...] = jnp.broadcast_to(s, ot_ref.shape)             # (N, block_b), full-lane vst


def linear_ones_relu6(x, n_out, *, small_b_threshold=256, block_b=512):
    """Equivalent of relu6(F.linear(x, torch.ones(n_out, K))) for x of shape (B, K)."""
    b, k = x.shape
    dtype = x.dtype

    if b <= small_b_threshold:
        # Launch-overhead-bound regime: single invocation, whole arrays in VMEM.
        return pl.pallas_call(
            _rowsum_relu6_small_kernel,
            out_shape=jax.ShapeDtypeStruct((b, n_out), dtype),
            in_specs=[pl.BlockSpec(memory_space=pltpu.MemorySpace.VMEM)],
            out_specs=pl.BlockSpec(memory_space=pltpu.MemorySpace.VMEM),
        )(x)

    # Mem-bound regime: lane-dense layout (B on the 128-lane axis), tiled grid.
    xt = x.T                                                     # (K, B) — layout plumbing
    block = min(block_b, b)
    grid = (pl.cdiv(b, block),)
    out_t = pl.pallas_call(
        _rowsum_relu6_lane_dense_kernel,
        out_shape=jax.ShapeDtypeStruct((n_out, b), dtype),
        grid_spec=pltpu.PrefetchScalarGridSpec(
            num_scalar_prefetch=0,
            grid=grid,
            in_specs=[pl.BlockSpec((k, block), lambda i: (0, i))],
            out_specs=pl.BlockSpec((n_out, block), lambda i: (0, i)),
        ),
        compiler_params=pltpu.CompilerParams(
            dimension_semantics=("parallel",),       # v7x: split batch across both TCs
            vmem_limit_bytes=64 << 20,               # bounded tiles; safe on v7x's 64 MiB
        ),
    )(xt)
    return out_t.T                                               # back to (B, n_out)


if __name__ == "__main__":
    key = jax.random.PRNGKey(0)
    k_small, k_big = jax.random.split(key)

    w = jnp.ones((4, 3), dtype=jnp.float32)

    # 1) Literal module shape: x1 = torch.randn(1, 3), W = torch.ones(4, 3).
    x1 = jax.random.normal(k_small, (1, 3), dtype=jnp.float32)
    out = linear_ones_relu6(x1, 4)
    jax.block_until_ready(out)
    ref = jnp.clip(x1 @ w.T, 0.0, 6.0)
    assert out.shape == (1, 4), out.shape
    assert jnp.allclose(out, ref, atol=1e-5), (out, ref)

    # 2) Batched case exercising the lane-dense tiled path.
    xb = jax.random.normal(k_big, (1024, 3), dtype=jnp.float32)
    out_b = linear_ones_relu6(xb, 4)
    jax.block_until_ready(out_b)
    ref_b = jnp.clip(xb @ w.T, 0.0, 6.0)
    assert out_b.shape == (1024, 4), out_b.shape
    assert jnp.allclose(out_b, ref_b, atol=1e-5)

    print("KERNEL_OK")
</pallas_src>

<mosaic_0001>
module attributes {stable_mosaic.version = 11 : i64} {
  func.func @_rowsum_relu6_small_kernel(%arg0: memref<1x3xf32, #tpu.memory_space<vmem>>, %arg1: memref<1x4xf32, #tpu.memory_space<vmem>>) attributes {dimension_semantics = [], scalar_prefetch = 0 : i64, scratch_operands = 0 : i64, tpu.core_type = #tpu.core_type<tc>} {
    %c0 = arith.constant 0 : index
    %c0_0 = arith.constant 0 : index
    %0 = vector.load %arg0[%c0, %c0_0] : memref<1x3xf32, #tpu.memory_space<vmem>>, vector<1x3xf32>
    %cst = arith.constant dense<0.000000e+00> : vector<1xf32>
    %1 = vector.multi_reduction <add>, %0, %cst [1] : vector<1x3xf32> to vector<1xf32>
    %2 = vector.shape_cast %1 : vector<1xf32> to vector<1x1xf32>
    %cst_1 = arith.constant 0.000000e+00 : f32
    %3 = vector.broadcast %cst_1 : f32 to vector<1x1xf32>
    %4 = arith.maximumf %2, %3 : vector<1x1xf32>
    %cst_2 = arith.constant 6.000000e+00 : f32
    %5 = vector.broadcast %cst_2 : f32 to vector<1x1xf32>
    %6 = arith.minimumf %4, %5 : vector<1x1xf32>
    %7 = vector.shape_cast %6 : vector<1x1xf32> to vector<1x1xf32>
    %8 = vector.broadcast %7 : vector<1x1xf32> to vector<1x4xf32>
    %c0_3 = arith.constant 0 : index
    %c0_4 = arith.constant 0 : index
    %9 = vector.load %arg1[%c0_3, %c0_4] : memref<1x4xf32, #tpu.memory_space<vmem>>, vector<1x4xf32>
    tpu.vector_store %arg1[%c0_3, %c0_4], %8 {strides = array<i32>} : memref<1x4xf32, #tpu.memory_space<vmem>>, vector<1x4xf32>,
    return
  }
}

</mosaic_0001>

<bundles_post_ra>
// kernel: tpu_custom_call.1
= control target key start
LH: loop header
LB: loop body
LE: loop exit
PB: predicated region body
PF: predicated region fallthrough
CT: control target
= control target key end

     0   :  { %6 = vsyncpa [#allocation3], 0  ;;  %s131_s0 = inlined_call_operand.hbm [shape: f32[1,3], index: 0, kind: input, shape index: {}]   ;;  %s132_s1 = inlined_call_operand.hbm [shape: f32[1,4], index: 1, kind: output, shape index: {}]  }
   0x1   :  { %7 = vsyncpa [#allocation4], 0  ;;  %s95_s6 = smov [#allocation2]   ;;  %s47_s10 = scalar_lea.hbm %s131_s0, 16 }
   0x2   :  { %s14_s7 = sshll.u32 %s95_s6, 4  ;;  %p48_p0 = scmp.ne.s32.totalorder %s131_s0, %s47_s10  ;;  %s15_s7 = int_to_ptr.vmem [resolvable:$true] %s14_s7 }
   0x3   :  { %p51_p1 = scmp.lt.u32.totalorder %s47_s10, %s131_s0 }
   0x5   :  { %p53_p2 = pnand %p51_p1, %p48_p0 }
   0x7   :  { %56 = shalt.err (!%p53_p2)
}
   0x8   :  { %s57_s15 = scalar_lea.vmem %s15_s7, 16  ;;  %s61_s16 = scalar_lea.vmem %s15_s7, 32 }
   0x9   :  { %p58_p3 = scmp.ne.s32.totalorder %s15_s7, %s57_s15  ;;  %p62_p4 = scmp.lt.s32.totalorder %s15_s7, %s15_s7 }
   0xa   :  { %p63_p5 = scmp.lt.s32.totalorder %s61_s16, %s57_s15 }
   0xc   :  { %p64_p6 = por %p63_p5, %p62_p4 }
   0xe   :  { %p65_p7 = pnand %p64_p6, %p58_p3 }
  0x10   :  { %68 = shalt.err (!%p65_p7)
}
  0x11   :  { %17 = dma.hbm_to_vmem [thread:$0]  %s131_s0, 16, %s15_s7, [#allocation3]  }
  0x12   :  { %91 = dma.done.wait [#allocation3], 16  }
  0x13   :  { %92 = vsyncadd [#allocation3], 4294967280  ;;  %vm22_vm0 = vcmask 16384   ;;  %v21_v0 = vld [vmem:[#allocation2] sm:$0x1]  ;;  %s96_s19 = smov [#allocation5]  }
  0x14   :  { %v23_v1 = vsel %vm22_vm0, %v21_v0, 0.0  ;;  %s36_s20 = sshll.u32 %s96_s19, 4  ;;  %vm28_vm1 = vcmask 24576   ;;  %s37_s20 = int_to_ptr.vmem [resolvable:$true] %s36_s20 }
  0x15   :  { %24 = vadd.xlane.f32.xlu0 %v23_v1  ;;  %s69_s21 = scalar_lea.vmem %s37_s20, 16  ;;  %s73_s22 = scalar_lea.vmem %s37_s20, 32 }
  0x16   :  { %p70_p8 = scmp.ne.s32.totalorder %s37_s20, %s69_s21  ;;  %p74_p9 = scmp.lt.s32.totalorder %s37_s20, %s37_s20 }
  0x17   :  { %p75_p10 = scmp.lt.s32.totalorder %s73_s22, %s69_s21 }
  0x19   :  { %p76_p11 = por %p75_p10, %p74_p9 }
  0x1b   :  { %p77_p12 = pnand %p76_p11, %p70_p8 }
  0xa2   :  { %v25_v2 = vpop.xlane.xlu0 %24 }
  0xa3   :  { %v26_v3 = vmax.f32 %v25_v2, 0.0 }
  0xa5   :  { %v27_v4 = vmin.f32 %v26_v3, 6.0 }
  0xa7   :  { %29 = vst.msk [vmem:[#allocation5] sm:$0x1] %vm28_vm1, %v27_v4 }
  0xa8   :  { %80 = shalt.err (!%p77_p12)
}
  0xa9   :  { %s81_s24 = scalar_lea.hbm %s132_s1, 16 }
  0xaa   :  { %p82_p13 = scmp.ne.s32.totalorder %s132_s1, %s81_s24  ;;  %p85_p0 = scmp.lt.u32.totalorder %s81_s24, %s132_s1 }
  0xac   :  { %p87_p1 = pnand %p85_p0, %p82_p13 }
  0xae   :  { %90 = shalt.err (!%p87_p1)
}
  0xaf   :  { %39 = dma.vmem_to_hbm [thread:$0]  %s37_s20, 16, %s132_s1, [#allocation4]  }
  0xb0   :  { %93 = dma.done.wait [#allocation4], 16  }
  0xb1   :  { %94 = vsyncadd [#allocation4], 4294967280 }
  0xb2   :  { %43 = vsyncpa [#allocation3], 1 }
  0xb3   :  { %44 = vsyncpa [#allocation4], 1 }

</bundles_post_ra>
